<compile_context>
chip_gen: v7x
topology: tpu7x:2x2x1
jax: 0.10.0
libtpu: 0.0.40
codegen_flags: <defaults>
</compile_context>

<pallas_src>
import math

import jax
import jax.numpy as jnp
from jax.experimental import pallas as pl
from jax.experimental.pallas import tpu as pltpu


def _round_up(a: int, b: int) -> int:
    return (a + b - 1) // b * b


def _shear_kernel(x_ref, top_ref, down_ref, o_ref):
    x = x_ref[...]
    lanes = x.shape[-1]
    # roll(x, lanes-1)[j] == x[(j+1) % lanes] ; roll(x, 1)[j] == x[(j-1) % lanes]
    up = pltpu.roll(x, lanes - 1, axis=1)
    dn = pltpu.roll(x, 1, axis=1)
    o_ref[...] = x + top_ref[...] * up + down_ref[...] * dn


def shear_forward(x, shear_top, shear_down, *, max_tile_rows=2048):
    """Apply the Shear layer: x @ (I + diag(top, +1) + diag(down, -1)).T"""
    n = x.shape[-1]
    assert shear_top.shape == (n - 1,) and shear_down.shape == (n - 1,)
    lead = x.shape[:-1]
    m = math.prod(lead) if lead else 1
    if m == 0:
        return x

    # Compute / output dtype == input dtype (bf16 stays narrow; f32 unchanged).
    cdtype = x.dtype
    zero = jnp.zeros((1,), dtype=cdtype)
    top_pad = jnp.concatenate([shear_top.astype(cdtype), zero])    # (n,)
    down_pad = jnp.concatenate([zero, shear_down.astype(cdtype)])  # (n,)

    # Lane-dense packing only when it's a FREE row-major reshape (no HBM copy):
    # 128 % n == 0 and pack divides the row count.  Otherwise copy-free fallback.
    pack = 128 // n if (n < 128 and 128 % n == 0) else 1
    if pack > 1 and m % pack != 0:
        pack = 1  # narrow lanes, but no pad-concatenate / output-slice round trip
    lanes = n * pack
    m_packed = m // pack

    # The interleaved zeros of the tiled pad vectors also kill cross-row
    # contamination of the lane roll inside a packed 128-wide row.
    top_row = jnp.tile(top_pad, pack).reshape(1, lanes)
    down_row = jnp.tile(down_pad, pack).reshape(1, lanes)

    x_in = x.reshape(m_packed, lanes)  # free row-major reshape, no copy

    # Tile rows: keep 2x(in)+2x(out) double-buffered blocks under ~12 MiB
    # (safe below v5e's 16 MiB scoped default), go big for narrow lanes, and
    # keep >= ~4 grid steps when there is enough work (v7x has 2 TCs).
    dbytes = jnp.dtype(cdtype).itemsize
    vmem_block_budget = 12 * 1024 * 1024
    tm_vmem = max(8, (vmem_block_budget // (4 * lanes * dbytes)) // 8 * 8)
    tm_target = max_tile_rows if lanes <= 512 else min(max_tile_rows, 512)
    tm_work = max(8, _round_up(pl.cdiv(m_packed, 4), 8))
    tm = min(tm_target, tm_vmem, tm_work)
    if tm > m_packed:
        tm = m_packed  # single block; block dim == full array dim is allowed

    # Ragged last block (m_packed % tm != 0) is handled by Pallas boundary
    # masking: garbage rows are computed elementwise and never written back.
    grid = (pl.cdiv(m_packed, tm),)

    out_packed = pl.pallas_call(
        _shear_kernel,
        out_shape=jax.ShapeDtypeStruct((m_packed, lanes), cdtype),
        grid=grid,
        in_specs=[
            pl.BlockSpec((tm, lanes), lambda i: (i, 0)),
            pl.BlockSpec((1, lanes), lambda i: (0, 0)),  # params stay VMEM-resident
            pl.BlockSpec((1, lanes), lambda i: (0, 0)),
        ],
        out_specs=pl.BlockSpec((tm, lanes), lambda i: (i, 0)),
        compiler_params=pltpu.CompilerParams(
            dimension_semantics=("parallel",),
            vmem_limit_bytes=32 * 1024 * 1024),
    )(x_in, top_row, down_row)

    return out_packed.reshape(*lead, n)  # free row-major reshape, no copy


def _reference(x, shear_top, shear_down):
    n = x.shape[-1]
    w = (jnp.eye(n, dtype=jnp.float32)
         + jnp.diag(shear_top.astype(jnp.float32), 1)
         + jnp.diag(shear_down.astype(jnp.float32), -1))
    return x.astype(jnp.float32) @ w.T


if __name__ == "__main__":
    key = jax.random.PRNGKey(0)
    k_x, k_top, k_down, k_x2, k_x3 = jax.random.split(key, 5)

    in_features = 32
    batch, seq = 2, 8

    # Deterministic "uniform_" init (U[0,1)) for the two shear parameter vectors.
    shear_top = jax.random.uniform(k_top, (in_features - 1,), dtype=jnp.float32)
    shear_down = jax.random.uniform(k_down, (in_features - 1,), dtype=jnp.float32)

    # Main case: lane-packed path (128 % n == 0, m % pack == 0), zero HBM copies.
    x = jax.random.normal(k_x, (batch, seq, in_features), dtype=jnp.float32)
    out = jax.block_until_ready(shear_forward(x, shear_top, shear_down))
    assert out.shape == (batch, seq, in_features)
    assert jnp.allclose(out, _reference(x, shear_top, shear_down),
                        atol=1e-5, rtol=1e-5)

    # Odd row count: copy-free fallback (pack=1) + ragged last grid block.
    x_odd = jax.random.normal(k_x2, (3, 5, in_features), dtype=jnp.float32)
    out_odd = jax.block_until_ready(shear_forward(x_odd, shear_top, shear_down))
    assert jnp.allclose(out_odd, _reference(x_odd, shear_top, shear_down),
                        atol=1e-5, rtol=1e-5)

    # bf16 input: narrow compute path (no f32 upcast inside the kernel).
    x_bf16 = jax.random.normal(k_x3, (4, 8, in_features), dtype=jnp.bfloat16)
    out_bf16 = jax.block_until_ready(shear_forward(x_bf16, shear_top, shear_down))
    assert out_bf16.dtype == jnp.bfloat16
    ref_bf16 = _reference(x_bf16.astype(jnp.float32), shear_top, shear_down)
    assert jnp.allclose(out_bf16.astype(jnp.float32), ref_bf16,
                        atol=1e-1, rtol=1e-1)

    print("KERNEL_OK")
</pallas_src>

<mosaic_0001>
module attributes {stable_mosaic.version = 11 : i64} {
  func.func @_shear_kernel(%arg0: i32, %arg1: memref<4x128xf32, #tpu.memory_space<vmem>>, %arg2: memref<1x128xf32, #tpu.memory_space<vmem>>, %arg3: memref<1x128xf32, #tpu.memory_space<vmem>>, %arg4: memref<4x128xf32, #tpu.memory_space<vmem>>) attributes {dimension_semantics = [#tpu.dimension_semantics<parallel>], iteration_bounds = array<i64: 1>, scalar_prefetch = 0 : i64, scratch_operands = 0 : i64, tpu.core_type = #tpu.core_type<tc>, window_params = [{transform_indices = @transform_0, window_bounds = array<i64: 4, 128>}, {pipeline_mode = #tpu.pipeline_mode<synchronous>, transform_indices = @transform_1, window_bounds = array<i64: 1, 128>}, {pipeline_mode = #tpu.pipeline_mode<synchronous>, transform_indices = @transform_2, window_bounds = array<i64: 1, 128>}, {transform_indices = @transform_3, window_bounds = array<i64: 4, 128>}]} {
    %c0 = arith.constant 0 : index
    %c0_0 = arith.constant 0 : index
    %0 = vector.load %arg1[%c0, %c0_0] : memref<4x128xf32, #tpu.memory_space<vmem>>, vector<4x128xf32>
    %c127_i32 = arith.constant 127 : i32
    %1 = tpu.dynamic_rotate %0 by %c127_i32 dim 1 : vector<4x128xf32>, i32 -> vector<4x128xf32>
    %c1_i32 = arith.constant 1 : i32
    %2 = tpu.dynamic_rotate %0 by %c1_i32 dim 1 : vector<4x128xf32>, i32 -> vector<4x128xf32>
    %c0_1 = arith.constant 0 : index
    %c0_2 = arith.constant 0 : index
    %3 = vector.load %arg2[%c0_1, %c0_2] : memref<1x128xf32, #tpu.memory_space<vmem>>, vector<1x128xf32>
    %4 = vector.broadcast %3 : vector<1x128xf32> to vector<4x128xf32>
    %5 = arith.mulf %4, %1 : vector<4x128xf32>
    %6 = arith.addf %0, %5 : vector<4x128xf32>
    %c0_3 = arith.constant 0 : index
    %c0_4 = arith.constant 0 : index
    %7 = vector.load %arg3[%c0_3, %c0_4] : memref<1x128xf32, #tpu.memory_space<vmem>>, vector<1x128xf32>
    %8 = vector.broadcast %7 : vector<1x128xf32> to vector<4x128xf32>
    %9 = arith.mulf %8, %2 : vector<4x128xf32>
    %10 = arith.addf %6, %9 : vector<4x128xf32>
    %c0_5 = arith.constant 0 : index
    %c0_6 = arith.constant 0 : index
    %11 = vector.load %arg4[%c0_5, %c0_6] : memref<4x128xf32, #tpu.memory_space<vmem>>, vector<4x128xf32>
    tpu.vector_store %arg4[%c0_5, %c0_6], %10 {strides = array<i32>} : memref<4x128xf32, #tpu.memory_space<vmem>>, vector<4x128xf32>,
    return
  }
  func.func @transform_0(%arg0: i32) -> (i32, i32) {
    %c0_i32 = arith.constant 0 : i32
    %c0_i32_0 = arith.constant 0 : i32
    return %arg0, %c0_i32 : i32, i32
  }
  func.func @transform_1(%arg0: i32) -> (i32, i32) {
    %c0_i32 = arith.constant 0 : i32
    %c0_i32_0 = arith.constant 0 : i32
    %c0_i32_1 = arith.constant 0 : i32
    return %c0_i32, %c0_i32_0 : i32, i32
  }
  func.func @transform_2(%arg0: i32) -> (i32, i32) {
    %c0_i32 = arith.constant 0 : i32
    %c0_i32_0 = arith.constant 0 : i32
    %c0_i32_1 = arith.constant 0 : i32
    return %c0_i32, %c0_i32_0 : i32, i32
  }
  func.func @transform_3(%arg0: i32) -> (i32, i32) {
    %c0_i32 = arith.constant 0 : i32
    %c0_i32_0 = arith.constant 0 : i32
    return %arg0, %c0_i32 : i32, i32
  }
}

</mosaic_0001>

<bundles_post_ra>
// kernel: tpu_custom_call.1
= control target key start
LH: loop header
LB: loop body
LE: loop exit
PB: predicated region body
PF: predicated region fallthrough
CT: control target
= control target key end

     0   :  { %8 = vsyncpa [#allocation3], 0  ;;  %s174_s0 = inlined_call_operand.hbm [shape: f32[4,128], index: 0, kind: input, shape index: {}]   ;;  %s175_s1 = inlined_call_operand.vmem [shape: f32[1,128], index: 1, kind: input, shape index: {}]   ;;  %s176_s2 = inlined_call_operand.vmem [shape: f32[1,128], index: 2, kind: input, shape index: {}]   ;;  %s177_s3 = inlined_call_operand.hbm [shape: f32[4,128], index: 3, kind: output, shape index: {}]  }
   0x1   :  { %9 = vsyncpa [#allocation4], 0  ;;  %s120_s12 = smov [#allocation2]   ;;  %s72_s16 = scalar_lea.hbm %s174_s0, 64 }
   0x2   :  { %s16_s13 = sshll.u32 %s120_s12, 4  ;;  %p73_p0 = scmp.ne.s32.totalorder %s174_s0, %s72_s16  ;;  %s17_s13 = int_to_ptr.vmem [resolvable:$true] %s16_s13 }
   0x3   :  { %p76_p1 = scmp.lt.u32.totalorder %s72_s16, %s174_s0 }
   0x5   :  { %p78_p2 = pnand %p76_p1, %p73_p0 }
   0x7   :  { %81 = shalt.err (!%p78_p2)
}
   0x8   :  { %s82_s21 = scalar_lea.vmem %s17_s13, 64  ;;  %p87_p4 = scmp.lt.s32.totalorder %s17_s13, %s17_s13 }
   0x9   :  { %p83_p3 = scmp.ne.s32.totalorder %s17_s13, %s82_s21  ;;  %p88_p5 = scmp.lt.s32.totalorder %s82_s21, %s82_s21 }
   0xb   :  { %p89_p6 = por %p88_p5, %p87_p4 }
   0xd   :  { %p90_p7 = pnand %p89_p6, %p83_p3 }
   0xf   :  { %93 = shalt.err (!%p90_p7)
}
  0x10   :  { %19 = dma.hbm_to_vmem [thread:$0]  %s174_s0, 64, %s17_s13, [#allocation3]  }
  0x11   :  { %116 = dma.done.wait [#allocation3], 64  }
  0x12   :  { %117 = vsyncadd [#allocation3], 4294967232  ;;  %v27_v0 = vld [vmem:[#allocation2] sm:$0xf]  ;;  %s121_s24 = smov 127   ;;  %s122_s25 = smov 1  }
  0x13   :  { %28 = vrot.lane.b32.xlu0 %v27_v0, %s121_s24  ;;  %v66_v1 = vld [vmem:[%s175_s1] ss:$0 sm:$0xff]  ;;  %s123_s30 = smov [#allocation5]  }
  0x14   :  { %v67_v4 = vld [vmem:[%s176_s2] ss:$0 sm:$0xff]  ;;  %s57_s0 = sshll.u32 %s123_s30, 4  ;;  %s58_s0 = int_to_ptr.vmem [resolvable:$true] %s57_s0 }
  0x15   :  { %s94_s4 = scalar_lea.vmem %s58_s0, 64  ;;  %p99_p9 = scmp.lt.s32.totalorder %s58_s0, %s58_s0 }
  0x16   :  { %p95_p8 = scmp.ne.s32.totalorder %s58_s0, %s94_s4  ;;  %p100_p10 = scmp.lt.s32.totalorder %s94_s4, %s94_s4 }
  0x17   :  { %30 = vrot.lane.b32.xlu0 %v27_v0, %s122_s25 }
  0x18   :  { %p101_p11 = por %p100_p10, %p99_p9 }
  0x1a   :  { %p102_p12 = pnand %p101_p11, %p95_p8 }
  0x85   :  { %v29_v2 = vpop.permute.xlu0 %28 }
  0x86   :  { %v39_v3 = vmul.f32 %v66_v1, %v29_v2 }
  0x88   :  { %v40_v6 = vadd.f32 %v39_v3, %v27_v0 }
  0x89   :  { %v31_v5 = vpop.permute.xlu0 %30 }
  0x8a   :  { %v48_v7 = vmul.f32 %v67_v4, %v31_v5 }
  0x8c   :  { %v49_v8 = vadd.f32 %v48_v7, %v40_v6 }
  0x8e   :  { %50 = vst [vmem:[#allocation5] sm:$0xf] %v49_v8 }
  0x8f   :  { %105 = shalt.err (!%p102_p12)
}
  0x90   :  { %s106_s6 = scalar_lea.hbm %s177_s3, 64 }
  0x91   :  { %p107_p13 = scmp.ne.s32.totalorder %s177_s3, %s106_s6  ;;  %p110_p0 = scmp.lt.u32.totalorder %s106_s6, %s177_s3 }
  0x93   :  { %p112_p1 = pnand %p110_p0, %p107_p13 }
  0x95   :  { %115 = shalt.err (!%p112_p1)
}
  0x96   :  { %60 = dma.vmem_to_hbm [thread:$0]  %s58_s0, 64, %s177_s3, [#allocation4]  }
  0x97   :  { %118 = dma.done.wait [#allocation4], 64  }
  0x98   :  { %119 = vsyncadd [#allocation4], 4294967232 }
  0x99   :  { %64 = vsyncpa [#allocation3], 1 }
  0x9a   :  { %65 = vsyncpa [#allocation4], 1 }

</bundles_post_ra>
